<compile_context>
chip_gen: v7x
topology: tpu7x:2x2x1
jax: 0.10.0
libtpu: 0.0.40
codegen_flags: <defaults>
</compile_context>

<pallas_src>
import numpy as np
import jax
import jax.numpy as jnp
from jax import lax
from jax.experimental import pallas as pl
from jax.experimental.pallas import tpu as pltpu


# ----------------------------------------------------------------------------
# Small host-side helpers
# ----------------------------------------------------------------------------
def _cdiv(a: int, b: int) -> int:
    return -(-a // b)


def _round_up(a: int, m: int) -> int:
    return _cdiv(a, m) * m


def _sublane_packing(dtype) -> int:
    # Rows per native sublane tile: 8 for 32-bit, 16 for 16-bit, 32 for 8-bit.
    bits = jnp.dtype(dtype).itemsize * 8
    return 8 * max(1, 32 // bits)


# ----------------------------------------------------------------------------
# Random band selection (mirrors FrequencyMaskingModule._random_freq_bnds)
# ----------------------------------------------------------------------------
def random_freq_bounds(key, n_freq: int, max_mask_len: int):
    """JAX equivalent of the module's Python-`random` band draw."""
    # TODO(synk): PyTorch uses host-side `random`; replicated with jax.random here.
    if max_mask_len < 1:
        raise ValueError("max_mask_len should be >= 1")
    k1, k2 = jax.random.split(key)
    # random.randint is inclusive on both ends.
    mask_len = jax.random.randint(k1, (), 0, max_mask_len + 1, dtype=jnp.int32)
    f0 = jax.random.randint(k2, (), 0, n_freq - mask_len, dtype=jnp.int32)
    return f0, f0 + mask_len


# ----------------------------------------------------------------------------
# Pallas kernel: zero the band inside one (tile_r, C) block of the (B, R, C) view
# ----------------------------------------------------------------------------
def _make_band_kernel(tile_r: int, n_cols: int, n_row_tiles: int, row_aligned: bool):
    def kernel(bnds_ref, x_ref, o_ref):
        # bnds_ref: SMEM (3,) int32 = [lo, hi, first_band_tile]  (scalar prefetch)
        # x_ref / o_ref: (tile_r, n_cols) tile of the (B, R, C) view (batch squeezed)
        lo = bnds_ref[0]
        hi = bnds_ref[1]
        # Recompute the (clamped, data-dependent) row-tile this step landed on.
        tile = jnp.minimum(bnds_ref[2] + pl.program_id(1), n_row_tiles - 1)
        r0 = tile * tile_r
        rows = r0 + lax.broadcasted_iota(jnp.int32, (tile_r, 1), 0)
        if row_aligned:
            band = (rows >= lo) & (rows < hi)                    # (tile_r, 1)
        else:
            lanes = lax.broadcasted_iota(jnp.int32, (1, n_cols), 1)
            flat = rows * n_cols + lanes                         # (tile_r, n_cols)
            band = (flat >= lo) & (flat < hi)
        x = x_ref[...]
        o_ref[...] = jnp.where(band, jnp.zeros((), x.dtype), x)
    return kernel


# ----------------------------------------------------------------------------
# Forward pass (functional: returns the masked spectrogram)
# ----------------------------------------------------------------------------
def frequency_masking_pallas(spectrogram: jnp.ndarray, f0, f1, *, max_mask_len: int):
    """Zero freq rows [f0, f1) of a (batch, freq, ...) spectrogram.

    max_mask_len is a static upper bound on f1 - f0 and sizes the band-only grid.
    For a zero-copy in-place update, jit with donate_argnums=(0,).
    """
    if spectrogram.ndim < 3:
        raise ValueError("expected spectrogram of shape (batch, freq, ...)")
    max_mask_len = int(max_mask_len)
    if max_mask_len < 1:
        raise ValueError("max_mask_len should be >= 1")

    shape = spectrogram.shape
    B, F = shape[0], shape[1]
    W = int(np.prod(shape[2:]))
    N = F * W
    dtype = spectrogram.dtype
    itemsize = dtype.itemsize
    packing = _sublane_packing(dtype)

    # ---- Layout: keep the last (lane) dim a multiple of 128 when possible ----
    if W % 128 == 0:
        R, C, row_aligned = F, W, True            # already lane-dense
    elif N % 128 == 0:
        R, C, row_aligned = N // 128, 128, False  # flatten (F, W) onto the lanes
    else:
        R, C, row_aligned = F, W, True            # fallback: correct, partial stores
    x = spectrogram.reshape(B, R, C)

    # ---- Freq-row tile: just covers the band, sublane-packed, <= ~2 MiB ----
    band_rows = _cdiv(max_mask_len * W, C)        # rows touched by a maximal band
    tile_r = _round_up(max(band_rows, 1), packing)
    budget_rows = max(packing, ((2 << 20) // max(1, C * itemsize)) // packing * packing)
    tile_r = min(tile_r, budget_rows)
    if tile_r >= R:
        tile_r = R                                # full-dim block is always legal
    n_row_tiles = _cdiv(R, tile_r)
    tile_elems = tile_r * C
    # Worst-case number of row-tiles a (contiguous) band can straddle.
    n_band_tiles = min(n_row_tiles, _cdiv(max_mask_len * W, tile_elems) + 1)

    # ---- Scalar-prefetched bounds (SMEM): [lo, hi, first band tile] ----
    f0 = jnp.asarray(f0, jnp.int32)
    f1 = jnp.asarray(f1, jnp.int32)
    if row_aligned:
        lo, hi = f0, f1                  # row units
    else:
        lo, hi = f0 * W, f1 * W          # flat-element units
    first_tile = (f0 * W) // tile_elems  # == f0 // tile_r when row_aligned
    bounds = jnp.stack([lo, hi, first_tile]).astype(jnp.int32)

    def idx_map(b, fi, bnds):
        # Data-dependent freq tile; clamp so any overshoot just revisits the last
        # tile (idempotent write, hence "arbitrary" on this grid axis).
        return (b, jnp.minimum(bnds[2] + fi, n_row_tiles - 1), 0)

    kernel = _make_band_kernel(tile_r, C, n_row_tiles, row_aligned)

    out = pl.pallas_call(
        kernel,
        out_shape=jax.ShapeDtypeStruct((B, R, C), dtype),
        grid_spec=pltpu.PrefetchScalarGridSpec(
            num_scalar_prefetch=1,
            grid=(B, n_band_tiles),
            in_specs=[pl.BlockSpec((None, tile_r, C), idx_map)],
            out_specs=pl.BlockSpec((None, tile_r, C), idx_map),
        ),
        # Operand 1 (the spectrogram; operand 0 is the prefetched bounds) aliases
        # output 0: unvisited tiles keep their HBM contents, callers may donate.
        input_output_aliases={1: 0},
        compiler_params=pltpu.CompilerParams(
            dimension_semantics=("parallel", "arbitrary")),
        cost_estimate=pl.CostEstimate(
            flops=0, transcendentals=0,
            bytes_accessed=2 * B * n_band_tiles * tile_elems * itemsize),
    )(bounds, x)

    return out.reshape(shape)


# ----------------------------------------------------------------------------
# Module-like wrapper mirroring the PyTorch class
# ----------------------------------------------------------------------------
class FrequencyMaskingModule:
    def __init__(self, n_fft: int, max_mask_len: int = 1, **ignore):
        self.max_mask_len = int(max_mask_len)
        if self.max_mask_len < 1:
            raise ValueError(
                f"max_mask_len should be >= 1. Why would you need FrequencyMasking "
                f"with {max_mask_len} band at all?")
        self.n_freq = n_fft // 2 + 1

    def __call__(self, spectrogram: jnp.ndarray, key) -> jnp.ndarray:
        f0, f1 = random_freq_bounds(key, self.n_freq, self.max_mask_len)
        return frequency_masking_pallas(spectrogram, f0, f1,
                                        max_mask_len=self.max_mask_len)


# ----------------------------------------------------------------------------
# Demo / correctness check
# ----------------------------------------------------------------------------
if __name__ == "__main__":
    n_fft = 254                      # -> n_freq = 128
    max_mask_len = 4
    B, T = 2, 16
    n_freq = n_fft // 2 + 1

    key = jax.random.PRNGKey(0)
    k_spec, k_mask = jax.random.split(key)
    spectrogram = jax.random.normal(k_spec, (B, n_freq, T, 2), dtype=jnp.float32)
    spec_np = np.asarray(spectrogram)           # host copy for references (donation-safe)

    masked_fn = jax.jit(frequency_masking_pallas,
                        static_argnames=("max_mask_len",),
                        donate_argnums=(0,))

    # Case 1: random band, mirroring the module's forward.
    f0, f1 = random_freq_bounds(k_mask, n_freq, max_mask_len)
    f0_i, f1_i = int(f0), int(f1)
    out = jax.block_until_ready(
        masked_fn(spectrogram, f0, f1, max_mask_len=max_mask_len))
    ref = spec_np.copy()
    ref[:, f0_i:f1_i, :, :] = 0.0
    assert out.shape == spec_np.shape, out.shape
    np.testing.assert_array_equal(np.asarray(out), ref)

    # Case 2: fixed band straddling a freq-tile boundary (guaranteed non-empty).
    spec2 = jnp.asarray(spec_np)
    out2 = jax.block_until_ready(
        masked_fn(spec2, jnp.int32(30), jnp.int32(34), max_mask_len=max_mask_len))
    ref2 = spec_np.copy()
    ref2[:, 30:34, :, :] = 0.0
    np.testing.assert_array_equal(np.asarray(out2), ref2)

    print("KERNEL_OK")
</pallas_src>

<mosaic_0001>
module attributes {stable_mosaic.version = 11 : i64} {
  func.func @kernel(%arg0: i32, %arg1: i32, %arg2: memref<3xi32, #tpu.memory_space<smem>>, %arg3: memref<1x8x128xf32, #tpu.memory_space<vmem>>, %arg4: memref<1x8x128xf32, #tpu.memory_space<vmem>>) attributes {dimension_semantics = [#tpu.dimension_semantics<parallel>, #tpu.dimension_semantics<arbitrary>], iteration_bounds = array<i64: 2, 2>, scalar_prefetch = 1 : i64, scratch_operands = 0 : i64, tpu.core_type = #tpu.core_type<tc>, window_params = [{transform_indices = @transform_0, window_bounds = array<i64: 1, 8, 128>}, {transform_indices = @transform_1, window_bounds = array<i64: 1, 8, 128>}]} {
    %c0 = arith.constant 0 : index
    %0 = memref.load %arg2[%c0] : memref<3xi32, #tpu.memory_space<smem>>
    %c1 = arith.constant 1 : index
    %1 = memref.load %arg2[%c1] : memref<3xi32, #tpu.memory_space<smem>>
    %c2 = arith.constant 2 : index
    %2 = memref.load %arg2[%c2] : memref<3xi32, #tpu.memory_space<smem>>
    %3 = arith.addi %2, %arg1 : i32
    %c3_i32 = arith.constant 3 : i32
    %4 = arith.minsi %3, %c3_i32 : i32
    %c8_i32 = arith.constant 8 : i32
    %5 = arith.muli %4, %c8_i32 : i32
    %6 = tpu.iota {dimensions = array<i32: 0>} : vector<8x1xi32>
    %7 = vector.broadcast %5 : i32 to vector<8x1xi32>
    %8 = arith.addi %7, %6 : vector<8x1xi32>
    %9 = tpu.iota {dimensions = array<i32: 1>} : vector<1x128xi32>
    %c128_i32 = arith.constant 128 : i32
    %10 = vector.broadcast %c128_i32 : i32 to vector<8x1xi32>
    %11 = arith.muli %8, %10 : vector<8x1xi32>
    %12 = vector.broadcast %11 : vector<8x1xi32> to vector<8x128xi32>
    %13 = vector.broadcast %9 : vector<1x128xi32> to vector<8x128xi32>
    %14 = arith.addi %12, %13 : vector<8x128xi32>
    %15 = vector.broadcast %0 : i32 to vector<8x128xi32>
    %16 = arith.cmpi sge, %14, %15 : vector<8x128xi32>
    %17 = vector.broadcast %1 : i32 to vector<8x128xi32>
    %18 = arith.cmpi slt, %14, %17 : vector<8x128xi32>
    %19 = arith.andi %16, %18 : vector<8x128xi1>
    %c0_0 = arith.constant 0 : index
    %c0_1 = arith.constant 0 : index
    %c0_2 = arith.constant 0 : index
    %20 = vector.load %arg3[%c0_0, %c0_1, %c0_2] : memref<1x8x128xf32, #tpu.memory_space<vmem>>, vector<1x8x128xf32>
    %21 = vector.shape_cast %20 : vector<1x8x128xf32> to vector<8x128xf32>
    %cst = arith.constant 0.000000e+00 : f32
    %22 = vector.broadcast %cst : f32 to vector<8x128xf32>
    %23 = arith.select %19, %22, %21 : vector<8x128xi1>, vector<8x128xf32>
    %c0_3 = arith.constant 0 : index
    %c0_4 = arith.constant 0 : index
    %c0_5 = arith.constant 0 : index
    %24 = vector.load %arg4[%c0_3, %c0_4, %c0_5] : memref<1x8x128xf32, #tpu.memory_space<vmem>>, vector<1x8x128xf32>
    %25 = vector.shape_cast %24 : vector<1x8x128xf32> to vector<8x128xf32>
    %26 = vector.shape_cast %23 : vector<8x128xf32> to vector<1x8x128xf32>
    tpu.vector_store %arg4[%c0_3, %c0_4, %c0_5], %26 {strides = array<i32>} : memref<1x8x128xf32, #tpu.memory_space<vmem>>, vector<1x8x128xf32>,
    return
  }
  func.func @transform_0(%arg0: i32, %arg1: i32, %arg2: memref<3xi32, #tpu.memory_space<smem>>) -> (i32, i32, i32) {
    %c2 = arith.constant 2 : index
    %0 = memref.load %arg2[%c2] : memref<3xi32, #tpu.memory_space<smem>>
    %1 = arith.addi %0, %arg1 : i32
    %c3_i32 = arith.constant 3 : i32
    %2 = arith.minsi %1, %c3_i32 : i32
    %c0_i32 = arith.constant 0 : i32
    %c0_i32_0 = arith.constant 0 : i32
    return %arg0, %2, %c0_i32 : i32, i32, i32
  }
  func.func @transform_1(%arg0: i32, %arg1: i32, %arg2: memref<3xi32, #tpu.memory_space<smem>>) -> (i32, i32, i32) {
    %c2 = arith.constant 2 : index
    %0 = memref.load %arg2[%c2] : memref<3xi32, #tpu.memory_space<smem>>
    %1 = arith.addi %0, %arg1 : i32
    %c3_i32 = arith.constant 3 : i32
    %2 = arith.minsi %1, %c3_i32 : i32
    %c0_i32 = arith.constant 0 : i32
    %c0_i32_0 = arith.constant 0 : i32
    return %arg0, %2, %c0_i32 : i32, i32, i32
  }
}

</mosaic_0001>

<bundles_post_ra>
// kernel: frequency_masking_pallas.1
= control target key start
LH: loop header
LB: loop body
LE: loop exit
PB: predicated region body
PF: predicated region fallthrough
CT: control target
= control target key end

     0   :  { %s516_s0 = inlined_call_operand.vmem [shape: s32[3], index: 0, kind: input, shape index: {}]   ;;  %s517_s1 = inlined_call_operand.vmem [shape: f32[2,32,128], index: 1, kind: input, shape index: {}, may-alias: {1,2}]   ;;  %s518_s2 = inlined_call_operand.vmem [shape: f32[2,32,128], index: 2, kind: output, shape index: {}, may-alias: {1,2}]  }
   0x1   :  { %s7_s11 = sshll.u32 %s516_s0, 4  ;;  %s8_s11 = int_to_ptr.vmem [resolvable:$true] %s7_s11 }
   0x2   :  { %s392_s12 = scalar_lea.vmem %s8_s11, 16  ;;  %p397_p1 = scmp.lt.s32.totalorder %s8_s11, %s8_s11 }
   0x3   :  { %p393_p0 = scmp.ne.s32.totalorder %s8_s11, %s392_s12  ;;  %p398_p2 = scmp.lt.s32.totalorder %s392_s12, %s392_s12 }
   0x5   :  { %p399_p3 = por %p398_p2, %p397_p1 }
   0x7   :  { %p400_p4 = pnand %p399_p3, %p393_p0 }
   0x9   :  { %403 = shalt.err (!%p400_p4)  }
   0xa   :  { %s446_s13 = smov [#allocation3]  }
   0xb   :  { %10 = dma.vmem_to_smem %s8_s11, 16, %s446_s13, [#allocation2] }
   0xc   :  { %424 = dma.done.wait [#allocation2], 16 }
   0xd   :  { %425 = vsyncadd [#allocation2], 4294967280 }
   0xe   :  { %12 = sfence }
   0xf   :  { %s465_s14 = smov 0   ;;  %s467_s15 = smov 0  }
  0x10   :  { %s469_s16 = smov 0   ;;  %s471_s0 = smov 0  }
  0x11   :  { %s473_s17 = smov 0  }
  0x12 LB: > { %s27_s18 = sadd.s32 1, %s436_s16  ;;  %s30_s19 = sadd.s32 1, %s440_s0  ;;  %s444_s17 = sphi %s473_s17, %s18_s17   ;;  %s440_s0 = sphi %s471_s0, %s522_s0   ;;  %s436_s16 = sphi %s469_s16, %s521_s16   ;;  %s432_s15 = sphi %s467_s15, %s520_s15   ;;  %s428_s14 = sphi %s465_s14, %s519_s14  }
  0x13   : > { %p28_p5 = scmp.ge.s32.totalorder %s27_s18, 2  ;;  %p333_p6 = scmp.ge.s32.totalorder %s444_s17, 1 }
  0x14   : > { %p137_p7 = scmp.lt.s32.totalorder %s444_s17, 5 }
  0x15   : > { %s524_s18 = smov (%p28_p5, %s27_s18), 0  ;;  %s526_s19 = smov (!%p28_p5, %s30_s19), %s440_s0 }
  0x16   : > { %p138_p8 = pnand %p333_p6, %p137_p7  ;;  %p32_p9 = scmp.ge.s32.totalorder %s526_s19, 2 }
  0x17   : > { %s334_s20 = sld [smem:[#allocation3 + $0x2]] (!%p138_p8)  ;;  %p175_p10 = scmp.lt.s32.totalorder (!%p138_p8), %s432_s15, 1  ;;  %v210_v0 = vlaneseq (!%p138_p8) }
  0x18   : > { %s528_s19 = smov (%p32_p9, %s526_s19), 0  ;;  %141 = sbr.rel (%p138_p8) target bundleno = 46 (0x2e), region = 24 }
  0x19   : > { %s203_s22 = sld [smem:[#allocation3]] (!%p138_p8)  ;;  %s346_s23 = sld [smem:[#allocation3 + $0x1]] (!%p138_p8)  ;;  %v211_v1 = vshrl.u32 (!%p138_p8), %v210_v0, 7  ;;  %v215_v4 = vand.u32 (!%p138_p8), 127, %v210_v0 }
  0x1d   : > { %s172_s21 = sadd.s32 (!%p138_p8), %s428_s14, %s334_s20 }
  0x1e   : > { %p173_p11 = scmp.lt.s32.totalorder (!%p138_p8), %s172_s21, 3 }
  0x1f   : > { %s530_s15 = smov (!%p175_p10, %s432_s15), 1  ;;  %v218_v6 = vstv %s203_s22  ;;  %v220_v7 = vstv %s346_s23 }
  0x20   : > { %s532_s21 = smov (!%p173_p11, %s172_s21), 3  ;;  %s338_s24 = sshll.u32 %s530_s15, 2 }
  0x21   : > { %s178_s25 = scalar_select %p173_p11, %s532_s21, 3 }
  0x22   : > { %s348_s26 = sshll.u32 %s532_s21, 3 }
  0x23   : > { %s180_s27 = sadd.s32 %s338_s24, %s178_s25  ;;  %v212_v2 = vstv %s348_s26 }
  0x24   : > { %s339_s28 = sshll.u32 %s180_s27, 3  ;;  %v213_v3 = vadd.s32 %v212_v2, %v211_v1 }
  0x25   : > { %s182_s3 = scalar_lea.vmem %s517_s1, %s339_s28  ;;  %s198_s6 = scalar_lea.vmem %s518_s2, %s339_s28 }
  0x26   : > { %v216_v5 = vmul.u32 128, %v213_v3  ;;  %v223_v9 = vld [vmem:[%s182_s3] sm:$0xff] }
  0x28   : > { %v217_v8 = vadd.s32 %v216_v5, %v215_v4 }
  0x2a   : > { %vm219_vm0 = vcmp.ge.s32.totalorder %v217_v8, %v218_v6  ;;  %vm221_vm1 = vcmp.lt.s32.totalorder %v217_v8, %v220_v7 }
  0x2b   : > { %vm222_vm2 = vmand %vm219_vm0, %vm221_vm1 }
  0x2c   : > { %v224_v10 = vsel %vm222_vm2, 0.0, %v223_v9 }
  0x2d   : > { %225 = vst [vmem:[%s198_s6] sm:$0xff] %v224_v10 }
  0x2e PF: > { %s18_s17 = sadd.s32 1, %s444_s17   ;;  %s519_s14 = smov %s436_s16 }
  0x2f   : > { %p15_p12 = scmp.ge.s32.totalorder %s18_s17, 6   ;;  %s520_s15 = smov %s440_s0 }
  0x30   : > { %s521_s16 = smov %s524_s18  ;;  %s522_s0 = smov %s528_s19 }
  0x31   :  { %17 = sbr.rel (!%p15_p12) target bundleno = 18 (0x12), region = 54 }

</bundles_post_ra>
